<compile_context>
chip_gen: v6e
topology: v6e:2x2x1
jax: 0.10.0
libtpu: 0.0.40
codegen_flags: <defaults>
</compile_context>

<pallas_src>
import functools

import jax
import jax.numpy as jnp
from jax.experimental import pallas as pl
from jax.experimental.pallas import tpu as pltpu

BN_EPS = 1e-5


# --------------------------------------------------------------------------- #
# Kernel
# --------------------------------------------------------------------------- #
def basic_block_kernel(x_ref, w1_ref, w2_ref, b1_ref, b2_ref, m_ref,
                       o_ref, h_ref, *, taps, matmul_dtype):
    # x_ref : (Cp, Mt)      input band, channels on sublanes, Mt = k_img*H*W lanes
    # w*_ref: (9, Cp, Cp)   per-tap conv weights (BN scale already folded in)
    # b*_ref: (Cp, 1)       folded BatchNorm bias
    # m_ref : (9, 1, Mt)    per-tap border-validity masks (0/1, f32)
    # o_ref : (Cp, Mt)      output band
    # h_ref : (Cp, Mt)      VMEM scratch staging conv1's activation
    Cp, Mt = x_ref.shape

    def conv3x3(src_ref, w_ref):
        # Nine accumulating K=Cp matmuls; taps generated with pltpu.roll (XLU)
        # and zeroed on image borders by the precomputed masks.  Source taps
        # are re-read from the ref each iteration to keep live ranges short.
        acc = None
        for k, s in enumerate(taps):
            a = src_ref[...]
            shifted = a if s == 0 else pltpu.roll(a, shift=(-s) % Mt, axis=1)
            patch = (shifted * m_ref[k]).astype(matmul_dtype)
            d = jnp.dot(w_ref[k], patch, preferred_element_type=jnp.float32)
            acc = d if acc is None else acc + d
        return acc

    # conv1 + bn1 (bias only; scale folded into weights) + relu, staged in VMEM
    h_ref[...] = jnp.maximum(conv3x3(x_ref, w1_ref) + b1_ref[...], 0.0)

    # conv2 + bn2, residual add (re-read x from VMEM), relu
    out = conv3x3(h_ref, w2_ref) + b2_ref[...]
    o_ref[...] = jnp.maximum(out + x_ref[...], 0.0)


# --------------------------------------------------------------------------- #
# Wrapper
# --------------------------------------------------------------------------- #
def _fold_bn(gamma, beta, mean, var):
    s = gamma / jnp.sqrt(var + BN_EPS)
    return s, beta - mean * s


def _pack_conv(w, scale, c_pad, matmul_dtype):
    # (Cout, Cin, 3, 3) -> (9, Cp, Cp), tap index k = ky*3 + kx, BN scale folded
    # into the cout rows; zero-padded to the sublane-aligned channel count.
    c = w.shape[0]
    wk = jnp.transpose(w, (2, 3, 0, 1)).reshape(9, c, c) * scale[None, :, None]
    wk = jnp.zeros((9, c_pad, c_pad), w.dtype).at[:, :c, :c].set(wk)
    return wk.astype(matmul_dtype)


def _pad_tile_bytes(rows, cols, itemsize=4):
    return ((rows + 7) // 8 * 8) * ((cols + 127) // 128 * 128) * itemsize


def basic_block_cm(x_cm, params, *, B, H, W, matmul_dtype=jnp.float32):
    """Lane-dense entry point.

    x_cm: (C, B*H*W) activations (channels on sublanes, flattened (b, y, x) on
    lanes).  Chain these across a BasicBlock stack and only convert to/from
    NCHW at the conv-trunk boundaries (saves two HBM transposes per block).
    """
    w1, w2, g1, be1, m1, v1, g2, be2, m2, v2 = params
    C = x_cm.shape[0]
    HW = H * W
    M = B * HW
    assert x_cm.shape == (C, M)
    assert w1.shape[0] == C and w2.shape[0] == C, "identity shortcut needs Cin == Cout"

    # --- fold BN (eval mode): scale -> weights, bias -> per-channel add ------
    s1, b1 = _fold_bn(g1, be1, m1, v1)
    s2, b2 = _fold_bn(g2, be2, m2, v2)

    # --- sublane-align the channel axis (no-op when C % 8 == 0) -------------
    Cp = max(8, -(-C // 8) * 8)
    x_p = x_cm if Cp == C else jnp.zeros((Cp, M), x_cm.dtype).at[:C].set(x_cm)

    w1p = _pack_conv(w1, s1, Cp, matmul_dtype)
    w2p = _pack_conv(w2, s2, Cp, matmul_dtype)
    b1p = jnp.zeros((Cp, 1), jnp.float32).at[:C, 0].set(b1)
    b2p = jnp.zeros((Cp, 1), jnp.float32).at[:C, 0].set(b2)

    # --- choose an image band so the lane block is 128-aligned --------------
    k_img = B
    for k in range(1, B + 1):
        if B % k == 0 and (k * HW) % 128 == 0:
            k_img = k
            break
    n_bands = B // k_img
    Mt = k_img * HW

    # --- precomputed per-tap shifts and border-validity masks ---------------
    row = jnp.repeat(jnp.arange(H), W)
    col = jnp.tile(jnp.arange(W), H)
    taps, masks = [], []
    for k in range(9):
        dy, dx = k // 3 - 1, k % 3 - 1
        taps.append(dy * W + dx)
        masks.append(((row + dy >= 0) & (row + dy < H) &
                      (col + dx >= 0) & (col + dx < W)).astype(jnp.float32))
    mask_band = jnp.tile(jnp.stack(masks), (1, k_img)).reshape(9, 1, Mt)

    # --- VMEM budget (double-buffered blocks + resident operands + scratch) --
    vmem_bytes = (2 * _pad_tile_bytes(Cp, Mt)                 # x blocks
                  + 2 * _pad_tile_bytes(Cp, Mt)               # out blocks
                  + 2 * 2 * 9 * _pad_tile_bytes(Cp, Cp)       # w1, w2
                  + 2 * 9 * _pad_tile_bytes(1, Mt)            # masks
                  + 2 * 2 * _pad_tile_bytes(Cp, 1)            # biases
                  + _pad_tile_bytes(Cp, Mt))                  # h scratch
    vmem_limit = int(min(64 << 20, max(2 * vmem_bytes, 8 << 20)))

    flops = 2 * (2 * C * (9 * C) * M)                         # two 3x3 convs
    bytes_accessed = 4 * (2 * C * M + 2 * 9 * C * C + 9 * HW + 2 * C)

    out_p = pl.pallas_call(
        functools.partial(basic_block_kernel, taps=tuple(taps),
                          matmul_dtype=matmul_dtype),
        out_shape=jax.ShapeDtypeStruct((Cp, M), jnp.float32),
        grid_spec=pltpu.PrefetchScalarGridSpec(
            num_scalar_prefetch=0,
            grid=(n_bands,),
            in_specs=[
                pl.BlockSpec((Cp, Mt), lambda i: (0, i)),          # x band
                pl.BlockSpec((9, Cp, Cp), lambda i: (0, 0, 0)),    # w1 (resident)
                pl.BlockSpec((9, Cp, Cp), lambda i: (0, 0, 0)),    # w2 (resident)
                pl.BlockSpec((Cp, 1), lambda i: (0, 0)),           # b1 (resident)
                pl.BlockSpec((Cp, 1), lambda i: (0, 0)),           # b2 (resident)
                pl.BlockSpec((9, 1, Mt), lambda i: (0, 0, 0)),     # masks (resident)
            ],
            out_specs=pl.BlockSpec((Cp, Mt), lambda i: (0, i)),
            scratch_shapes=[pltpu.VMEM((Cp, Mt), jnp.float32)],    # conv1 activation
        ),
        compiler_params=pltpu.CompilerParams(
            dimension_semantics=("parallel",),
            vmem_limit_bytes=vmem_limit),
        cost_estimate=pl.CostEstimate(flops=flops, transcendentals=0,
                                      bytes_accessed=bytes_accessed),
    )(x_p, w1p, w2p, b1p, b2p, mask_band)

    return out_p[:C]


def basic_block(x_nchw, params, *, matmul_dtype=jnp.float32):
    """Forward of BasicBlock(inplanes=C, planes=C, stride=1, downsample=None)."""
    B, C, H, W = x_nchw.shape
    x_cm = jnp.transpose(x_nchw, (1, 0, 2, 3)).reshape(C, B * H * W)
    out_cm = basic_block_cm(x_cm, params, B=B, H=H, W=W, matmul_dtype=matmul_dtype)
    return jnp.transpose(out_cm.reshape(C, B, H, W), (1, 0, 2, 3))


# --------------------------------------------------------------------------- #
# Pure-JAX reference (mirrors the PyTorch forward, eval-mode BN)
# --------------------------------------------------------------------------- #
def basic_block_ref(x_nchw, params):
    w1, w2, g1, be1, m1, v1, g2, be2, m2, v2 = params
    x = jnp.transpose(x_nchw, (0, 2, 3, 1))

    def conv(h, w):
        w_hwio = jnp.transpose(w, (2, 3, 1, 0))
        return jax.lax.conv_general_dilated(
            h, w_hwio, window_strides=(1, 1), padding="SAME",
            dimension_numbers=("NHWC", "HWIO", "NHWC"))

    def bn(h, g, b, m, v):
        return (h - m) / jnp.sqrt(v + BN_EPS) * g + b

    out = jax.nn.relu(bn(conv(x, w1), g1, be1, m1, v1))
    out = bn(conv(out, w2), g2, be2, m2, v2)
    out = jax.nn.relu(out + x)
    return jnp.transpose(out, (0, 3, 1, 2))


if __name__ == "__main__":
    key = jax.random.PRNGKey(0)
    B, C, H, W = 2, 4, 16, 16           # inplanes = planes = 4, stride = 1
    ks = jax.random.split(key, 11)

    x = jax.random.normal(ks[0], (B, C, H, W), jnp.float32)

    w1 = 0.1 * jax.random.normal(ks[1], (C, C, 3, 3), jnp.float32)
    w2 = 0.1 * jax.random.normal(ks[2], (C, C, 3, 3), jnp.float32)
    g1 = 1.0 + 0.1 * jax.random.normal(ks[3], (C,), jnp.float32)
    be1 = 0.1 * jax.random.normal(ks[4], (C,), jnp.float32)
    m1 = 0.1 * jax.random.normal(ks[5], (C,), jnp.float32)
    v1 = jnp.abs(jax.random.normal(ks[6], (C,), jnp.float32)) + 0.5
    g2 = 1.0 + 0.1 * jax.random.normal(ks[7], (C,), jnp.float32)
    be2 = 0.1 * jax.random.normal(ks[8], (C,), jnp.float32)
    m2 = 0.1 * jax.random.normal(ks[9], (C,), jnp.float32)
    v2 = jnp.abs(jax.random.normal(ks[10], (C,), jnp.float32)) + 0.5

    params = (w1, w2, g1, be1, m1, v1, g2, be2, m2, v2)

    out = basic_block(x, params)          # f32 matmul operands (bit-faithful)
    jax.block_until_ready(out)

    ref = basic_block_ref(x, params)
    assert out.shape == (B, C, H, W)
    assert jnp.allclose(out, ref, atol=1e-4, rtol=1e-4), "mismatch vs reference"

    print("KERNEL_OK")
</pallas_src>

<mosaic_0001>
module attributes {stable_mosaic.version = 11 : i64} {
  func.func @basic_block_kernel(%arg0: i32, %arg1: memref<8x256xf32, #tpu.memory_space<vmem>>, %arg2: memref<9x8x8xf32, #tpu.memory_space<vmem>>, %arg3: memref<9x8x8xf32, #tpu.memory_space<vmem>>, %arg4: memref<8x1xf32, #tpu.memory_space<vmem>>, %arg5: memref<8x1xf32, #tpu.memory_space<vmem>>, %arg6: memref<9x1x256xf32, #tpu.memory_space<vmem>>, %arg7: memref<8x256xf32, #tpu.memory_space<vmem>>, %arg8: memref<8x256xf32, #tpu.memory_space<vmem>>) attributes {dimension_semantics = [#tpu.dimension_semantics<parallel>], iteration_bounds = array<i64: 2>, scalar_prefetch = 0 : i64, scratch_operands = 1 : i64, tpu.core_type = #tpu.core_type<tc>, window_params = [{transform_indices = @transform_0, window_bounds = array<i64: 8, 256>}, {pipeline_mode = #tpu.pipeline_mode<synchronous>, transform_indices = @transform_1, window_bounds = array<i64: 9, 8, 8>}, {pipeline_mode = #tpu.pipeline_mode<synchronous>, transform_indices = @transform_2, window_bounds = array<i64: 9, 8, 8>}, {pipeline_mode = #tpu.pipeline_mode<synchronous>, transform_indices = @transform_3, window_bounds = array<i64: 8, 1>}, {pipeline_mode = #tpu.pipeline_mode<synchronous>, transform_indices = @transform_4, window_bounds = array<i64: 8, 1>}, {pipeline_mode = #tpu.pipeline_mode<synchronous>, transform_indices = @transform_5, window_bounds = array<i64: 9, 1, 256>}, {transform_indices = @transform_6, window_bounds = array<i64: 8, 256>}]} {
    %c0 = arith.constant 0 : index
    %c0_0 = arith.constant 0 : index
    %0 = vector.load %arg1[%c0, %c0_0] : memref<8x256xf32, #tpu.memory_space<vmem>>, vector<8x256xf32>
    %c17_i32 = arith.constant 17 : i32
    %1 = tpu.dynamic_rotate %0 by %c17_i32 dim 1 : vector<8x256xf32>, i32 -> vector<8x256xf32>
    %c0_1 = arith.constant 0 : index
    %c0_2 = arith.constant 0 : index
    %c0_3 = arith.constant 0 : index
    %2 = vector.load %arg6[%c0_1, %c0_2, %c0_3] : memref<9x1x256xf32, #tpu.memory_space<vmem>>, vector<1x1x256xf32>
    %3 = vector.shape_cast %2 : vector<1x1x256xf32> to vector<1x256xf32>
    %4 = vector.broadcast %3 : vector<1x256xf32> to vector<8x256xf32>
    %5 = arith.mulf %1, %4 : vector<8x256xf32>
    %c0_4 = arith.constant 0 : index
    %c0_5 = arith.constant 0 : index
    %c0_6 = arith.constant 0 : index
    %6 = vector.load %arg2[%c0_4, %c0_5, %c0_6] : memref<9x8x8xf32, #tpu.memory_space<vmem>>, vector<1x8x8xf32>
    %7 = vector.shape_cast %6 : vector<1x8x8xf32> to vector<8x8xf32>
    %cst = arith.constant dense<0.000000e+00> : vector<8x256xf32>
    %8 = tpu.matmul %7, %5, %cst {dimension_numbers = #tpu.dot_dimension_numbers<[1], [0], [0], [1], [0, 0, 1, 1], [], []>} : vector<8x8xf32>, vector<8x256xf32>, vector<8x256xf32> -> vector<8x256xf32>
    %c0_7 = arith.constant 0 : index
    %c0_8 = arith.constant 0 : index
    %9 = vector.load %arg1[%c0_7, %c0_8] : memref<8x256xf32, #tpu.memory_space<vmem>>, vector<8x256xf32>
    %c16_i32 = arith.constant 16 : i32
    %10 = tpu.dynamic_rotate %9 by %c16_i32 dim 1 : vector<8x256xf32>, i32 -> vector<8x256xf32>
    %c1 = arith.constant 1 : index
    %c0_9 = arith.constant 0 : index
    %c0_10 = arith.constant 0 : index
    %11 = vector.load %arg6[%c1, %c0_9, %c0_10] : memref<9x1x256xf32, #tpu.memory_space<vmem>>, vector<1x1x256xf32>
    %12 = vector.shape_cast %11 : vector<1x1x256xf32> to vector<1x256xf32>
    %13 = vector.broadcast %12 : vector<1x256xf32> to vector<8x256xf32>
    %14 = arith.mulf %10, %13 : vector<8x256xf32>
    %c1_11 = arith.constant 1 : index
    %c0_12 = arith.constant 0 : index
    %c0_13 = arith.constant 0 : index
    %15 = vector.load %arg2[%c1_11, %c0_12, %c0_13] : memref<9x8x8xf32, #tpu.memory_space<vmem>>, vector<1x8x8xf32>
    %16 = vector.shape_cast %15 : vector<1x8x8xf32> to vector<8x8xf32>
    %cst_14 = arith.constant dense<0.000000e+00> : vector<8x256xf32>
    %17 = tpu.matmul %16, %14, %cst_14 {dimension_numbers = #tpu.dot_dimension_numbers<[1], [0], [0], [1], [0, 0, 1, 1], [], []>} : vector<8x8xf32>, vector<8x256xf32>, vector<8x256xf32> -> vector<8x256xf32>
    %18 = arith.addf %8, %17 : vector<8x256xf32>
    %c0_15 = arith.constant 0 : index
    %c0_16 = arith.constant 0 : index
    %19 = vector.load %arg1[%c0_15, %c0_16] : memref<8x256xf32, #tpu.memory_space<vmem>>, vector<8x256xf32>
    %c15_i32 = arith.constant 15 : i32
    %20 = tpu.dynamic_rotate %19 by %c15_i32 dim 1 : vector<8x256xf32>, i32 -> vector<8x256xf32>
    %c2 = arith.constant 2 : index
    %c0_17 = arith.constant 0 : index
    %c0_18 = arith.constant 0 : index
    %21 = vector.load %arg6[%c2, %c0_17, %c0_18] : memref<9x1x256xf32, #tpu.memory_space<vmem>>, vector<1x1x256xf32>
    %22 = vector.shape_cast %21 : vector<1x1x256xf32> to vector<1x256xf32>
    %23 = vector.broadcast %22 : vector<1x256xf32> to vector<8x256xf32>
    %24 = arith.mulf %20, %23 : vector<8x256xf32>
    %c2_19 = arith.constant 2 : index
    %c0_20 = arith.constant 0 : index
    %c0_21 = arith.constant 0 : index
    %25 = vector.load %arg2[%c2_19, %c0_20, %c0_21] : memref<9x8x8xf32, #tpu.memory_space<vmem>>, vector<1x8x8xf32>
    %26 = vector.shape_cast %25 : vector<1x8x8xf32> to vector<8x8xf32>
    %cst_22 = arith.constant dense<0.000000e+00> : vector<8x256xf32>
    %27 = tpu.matmul %26, %24, %cst_22 {dimension_numbers = #tpu.dot_dimension_numbers<[1], [0], [0], [1], [0, 0, 1, 1], [], []>} : vector<8x8xf32>, vector<8x256xf32>, vector<8x256xf32> -> vector<8x256xf32>
    %28 = arith.addf %18, %27 : vector<8x256xf32>
    %c0_23 = arith.constant 0 : index
    %c0_24 = arith.constant 0 : index
    %29 = vector.load %arg1[%c0_23, %c0_24] : memref<8x256xf32, #tpu.memory_space<vmem>>, vector<8x256xf32>
    %c1_i32 = arith.constant 1 : i32
    %30 = tpu.dynamic_rotate %29 by %c1_i32 dim 1 : vector<8x256xf32>, i32 -> vector<8x256xf32>
    %c3 = arith.constant 3 : index
    %c0_25 = arith.constant 0 : index
    %c0_26 = arith.constant 0 : index
    %31 = vector.load %arg6[%c3, %c0_25, %c0_26] : memref<9x1x256xf32, #tpu.memory_space<vmem>>, vector<1x1x256xf32>
    %32 = vector.shape_cast %31 : vector<1x1x256xf32> to vector<1x256xf32>
    %33 = vector.broadcast %32 : vector<1x256xf32> to vector<8x256xf32>
    %34 = arith.mulf %30, %33 : vector<8x256xf32>
    %c3_27 = arith.constant 3 : index
    %c0_28 = arith.constant 0 : index
    %c0_29 = arith.constant 0 : index
    %35 = vector.load %arg2[%c3_27, %c0_28, %c0_29] : memref<9x8x8xf32, #tpu.memory_space<vmem>>, vector<1x8x8xf32>
    %36 = vector.shape_cast %35 : vector<1x8x8xf32> to vector<8x8xf32>
    %cst_30 = arith.constant dense<0.000000e+00> : vector<8x256xf32>
    %37 = tpu.matmul %36, %34, %cst_30 {dimension_numbers = #tpu.dot_dimension_numbers<[1], [0], [0], [1], [0, 0, 1, 1], [], []>} : vector<8x8xf32>, vector<8x256xf32>, vector<8x256xf32> -> vector<8x256xf32>
    %38 = arith.addf %28, %37 : vector<8x256xf32>
    %c0_31 = arith.constant 0 : index
    %c0_32 = arith.constant 0 : index
    %39 = vector.load %arg1[%c0_31, %c0_32] : memref<8x256xf32, #tpu.memory_space<vmem>>, vector<8x256xf32>
    %c4 = arith.constant 4 : index
    %c0_33 = arith.constant 0 : index
    %c0_34 = arith.constant 0 : index
    %40 = vector.load %arg6[%c4, %c0_33, %c0_34] : memref<9x1x256xf32, #tpu.memory_space<vmem>>, vector<1x1x256xf32>
    %41 = vector.shape_cast %40 : vector<1x1x256xf32> to vector<1x256xf32>
    %42 = vector.broadcast %41 : vector<1x256xf32> to vector<8x256xf32>
    %43 = arith.mulf %39, %42 : vector<8x256xf32>
    %c4_35 = arith.constant 4 : index
    %c0_36 = arith.constant 0 : index
    %c0_37 = arith.constant 0 : index
    %44 = vector.load %arg2[%c4_35, %c0_36, %c0_37] : memref<9x8x8xf32, #tpu.memory_space<vmem>>, vector<1x8x8xf32>
    %45 = vector.shape_cast %44 : vector<1x8x8xf32> to vector<8x8xf32>
    %cst_38 = arith.constant dense<0.000000e+00> : vector<8x256xf32>
    %46 = tpu.matmul %45, %43, %cst_38 {dimension_numbers = #tpu.dot_dimension_numbers<[1], [0], [0], [1], [0, 0, 1, 1], [], []>} : vector<8x8xf32>, vector<8x256xf32>, vector<8x256xf32> -> vector<8x256xf32>
    %47 = arith.addf %38, %46 : vector<8x256xf32>
    %c0_39 = arith.constant 0 : index
    %c0_40 = arith.constant 0 : index
    %48 = vector.load %arg1[%c0_39, %c0_40] : memref<8x256xf32, #tpu.memory_space<vmem>>, vector<8x256xf32>
    %c255_i32 = arith.constant 255 : i32
    %49 = tpu.dynamic_rotate %48 by %c255_i32 dim 1 : vector<8x256xf32>, i32 -> vector<8x256xf32>
    %c5 = arith.constant 5 : index
    %c0_41 = arith.constant 0 : index
    %c0_42 = arith.constant 0 : index
    %50 = vector.load %arg6[%c5, %c0_41, %c0_42] : memref<9x1x256xf32, #tpu.memory_space<vmem>>, vector<1x1x256xf32>
    %51 = vector.shape_cast %50 : vector<1x1x256xf32> to vector<1x256xf32>
    %52 = vector.broadcast %51 : vector<1x256xf32> to vector<8x256xf32>
    %53 = arith.mulf %49, %52 : vector<8x256xf32>
    %c5_43 = arith.constant 5 : index
    %c0_44 = arith.constant 0 : index
    %c0_45 = arith.constant 0 : index
    %54 = vector.load %arg2[%c5_43, %c0_44, %c0_45] : memref<9x8x8xf32, #tpu.memory_space<vmem>>, vector<1x8x8xf32>
    %55 = vector.shape_cast %54 : vector<1x8x8xf32> to vector<8x8xf32>
    %cst_46 = arith.constant dense<0.000000e+00> : vector<8x256xf32>
    %56 = tpu.matmul %55, %53, %cst_46 {dimension_numbers = #tpu.dot_dimension_numbers<[1], [0], [0], [1], [0, 0, 1, 1], [], []>} : vector<8x8xf32>, vector<8x256xf32>, vector<8x256xf32> -> vector<8x256xf32>
    %57 = arith.addf %47, %56 : vector<8x256xf32>
    %c0_47 = arith.constant 0 : index
    %c0_48 = arith.constant 0 : index
    %58 = vector.load %arg1[%c0_47, %c0_48] : memref<8x256xf32, #tpu.memory_space<vmem>>, vector<8x256xf32>
    %c241_i32 = arith.constant 241 : i32
    %59 = tpu.dynamic_rotate %58 by %c241_i32 dim 1 : vector<8x256xf32>, i32 -> vector<8x256xf32>
    %c6 = arith.constant 6 : index
    %c0_49 = arith.constant 0 : index
    %c0_50 = arith.constant 0 : index
    %60 = vector.load %arg6[%c6, %c0_49, %c0_50] : memref<9x1x256xf32, #tpu.memory_space<vmem>>, vector<1x1x256xf32>
    %61 = vector.shape_cast %60 : vector<1x1x256xf32> to vector<1x256xf32>
    %62 = vector.broadcast %61 : vector<1x256xf32> to vector<8x256xf32>
    %63 = arith.mulf %59, %62 : vector<8x256xf32>
    %c6_51 = arith.constant 6 : index
    %c0_52 = arith.constant 0 : index
    %c0_53 = arith.constant 0 : index
    %64 = vector.load %arg2[%c6_51, %c0_52, %c0_53] : memref<9x8x8xf32, #tpu.memory_space<vmem>>, vector<1x8x8xf32>
    %65 = vector.shape_cast %64 : vector<1x8x8xf32> to vector<8x8xf32>
    %cst_54 = arith.constant dense<0.000000e+00> : vector<8x256xf32>
    %66 = tpu.matmul %65, %63, %cst_54 {dimension_numbers = #tpu.dot_dimension_numbers<[1], [0], [0], [1], [0, 0, 1, 1], [], []>} : vector<8x8xf32>, vector<8x256xf32>, vector<8x256xf32> -> vector<8x256xf32>
    %67 = arith.addf %57, %66 : vector<8x256xf32>
    %c0_55 = arith.constant 0 : index
    %c0_56 = arith.constant 0 : index
    %68 = vector.load %arg1[%c0_55, %c0_56] : memref<8x256xf32, #tpu.memory_space<vmem>>, vector<8x256xf32>
    %c240_i32 = arith.constant 240 : i32
    %69 = tpu.dynamic_rotate %68 by %c240_i32 dim 1 : vector<8x256xf32>, i32 -> vector<8x256xf32>
    %c7 = arith.constant 7 : index
    %c0_57 = arith.constant 0 : index
    %c0_58 = arith.constant 0 : index
    %70 = vector.load %arg6[%c7, %c0_57, %c0_58] : memref<9x1x256xf32, #tpu.memory_space<vmem>>, vector<1x1x256xf32>
    %71 = vector.shape_cast %70 : vector<1x1x256xf32> to vector<1x256xf32>
    %72 = vector.broadcast %71 : vector<1x256xf32> to vector<8x256xf32>
    %73 = arith.mulf %69, %72 : vector<8x256xf32>
    %c7_59 = arith.constant 7 : index
    %c0_60 = arith.constant 0 : index
    %c0_61 = arith.constant 0 : index
    %74 = vector.load %arg2[%c7_59, %c0_60, %c0_61] : memref<9x8x8xf32, #tpu.memory_space<vmem>>, vector<1x8x8xf32>
    %75 = vector.shape_cast %74 : vector<1x8x8xf32> to vector<8x8xf32>
    %cst_62 = arith.constant dense<0.000000e+00> : vector<8x256xf32>
    %76 = tpu.matmul %75, %73, %cst_62 {dimension_numbers = #tpu.dot_dimension_numbers<[1], [0], [0], [1], [0, 0, 1, 1], [], []>} : vector<8x8xf32>, vector<8x256xf32>, vector<8x256xf32> -> vector<8x256xf32>
    %77 = arith.addf %67, %76 : vector<8x256xf32>
    %c0_63 = arith.constant 0 : index
    %c0_64 = arith.constant 0 : index
    %78 = vector.load %arg1[%c0_63, %c0_64] : memref<8x256xf32, #tpu.memory_space<vmem>>, vector<8x256xf32>
    %c239_i32 = arith.constant 239 : i32
    %79 = tpu.dynamic_rotate %78 by %c239_i32 dim 1 : vector<8x256xf32>, i32 -> vector<8x256xf32>
    %c8 = arith.constant 8 : index
    %c0_65 = arith.constant 0 : index
    %c0_66 = arith.constant 0 : index
    %80 = vector.load %arg6[%c8, %c0_65, %c0_66] : memref<9x1x256xf32, #tpu.memory_space<vmem>>, vector<1x1x256xf32>
    %81 = vector.shape_cast %80 : vector<1x1x256xf32> to vector<1x256xf32>
    %82 = vector.broadcast %81 : vector<1x256xf32> to vector<8x256xf32>
    %83 = arith.mulf %79, %82 : vector<8x256xf32>
    %c8_67 = arith.constant 8 : index
    %c0_68 = arith.constant 0 : index
    %c0_69 = arith.constant 0 : index
    %84 = vector.load %arg2[%c8_67, %c0_68, %c0_69] : memref<9x8x8xf32, #tpu.memory_space<vmem>>, vector<1x8x8xf32>
    %85 = vector.shape_cast %84 : vector<1x8x8xf32> to vector<8x8xf32>
    %cst_70 = arith.constant dense<0.000000e+00> : vector<8x256xf32>
    %86 = tpu.matmul %85, %83, %cst_70 {dimension_numbers = #tpu.dot_dimension_numbers<[1], [0], [0], [1], [0, 0, 1, 1], [], []>} : vector<8x8xf32>, vector<8x256xf32>, vector<8x256xf32> -> vector<8x256xf32>
    %87 = arith.addf %77, %86 : vector<8x256xf32>
    %c0_71 = arith.constant 0 : index
    %c0_72 = arith.constant 0 : index
    %88 = vector.load %arg4[%c0_71, %c0_72] : memref<8x1xf32, #tpu.memory_space<vmem>>, vector<8x1xf32>
    %89 = vector.broadcast %88 : vector<8x1xf32> to vector<8x256xf32>
    %90 = arith.addf %87, %89 : vector<8x256xf32>
    %cst_73 = arith.constant 0.000000e+00 : f32
    %91 = vector.broadcast %cst_73 : f32 to vector<8x256xf32>
    %92 = arith.maximumf %90, %91 : vector<8x256xf32>
    %c0_74 = arith.constant 0 : index
    %c0_75 = arith.constant 0 : index
    %93 = vector.load %arg8[%c0_74, %c0_75] : memref<8x256xf32, #tpu.memory_space<vmem>>, vector<8x256xf32>
    tpu.vector_store %arg8[%c0_74, %c0_75], %92 {strides = array<i32>} : memref<8x256xf32, #tpu.memory_space<vmem>>, vector<8x256xf32>,
    %c0_76 = arith.constant 0 : index
    %c0_77 = arith.constant 0 : index
    %94 = vector.load %arg8[%c0_76, %c0_77] : memref<8x256xf32, #tpu.memory_space<vmem>>, vector<8x256xf32>
    %c17_i32_78 = arith.constant 17 : i32
    %95 = tpu.dynamic_rotate %94 by %c17_i32_78 dim 1 : vector<8x256xf32>, i32 -> vector<8x256xf32>
    %c0_79 = arith.constant 0 : index
    %c0_80 = arith.constant 0 : index
    %c0_81 = arith.constant 0 : index
    %96 = vector.load %arg6[%c0_79, %c0_80, %c0_81] : memref<9x1x256xf32, #tpu.memory_space<vmem>>, vector<1x1x256xf32>
    %97 = vector.shape_cast %96 : vector<1x1x256xf32> to vector<1x256xf32>
    %98 = vector.broadcast %97 : vector<1x256xf32> to vector<8x256xf32>
    %99 = arith.mulf %95, %98 : vector<8x256xf32>
    %c0_82 = arith.constant 0 : index
    %c0_83 = arith.constant 0 : index
    %c0_84 = arith.constant 0 : index
    %100 = vector.load %arg3[%c0_82, %c0_83, %c0_84] : memref<9x8x8xf32, #tpu.memory_space<vmem>>, vector<1x8x8xf32>
    %101 = vector.shape_cast %100 : vector<1x8x8xf32> to vector<8x8xf32>
    %cst_85 = arith.constant dense<0.000000e+00> : vector<8x256xf32>
    %102 = tpu.matmul %101, %99, %cst_85 {dimension_numbers = #tpu.dot_dimension_numbers<[1], [0], [0], [1], [0, 0, 1, 1], [], []>} : vector<8x8xf32>, vector<8x256xf32>, vector<8x256xf32> -> vector<8x256xf32>
    %c0_86 = arith.constant 0 : index
    %c0_87 = arith.constant 0 : index
    %103 = vector.load %arg8[%c0_86, %c0_87] : memref<8x256xf32, #tpu.memory_space<vmem>>, vector<8x256xf32>
    %c16_i32_88 = arith.constant 16 : i32
    %104 = tpu.dynamic_rotate %103 by %c16_i32_88 dim 1 : vector<8x256xf32>, i32 -> vector<8x256xf32>
    %c1_89 = arith.constant 1 : index
    %c0_90 = arith.constant 0 : index
    %c0_91 = arith.constant 0 : index
    %105 = vector.load %arg6[%c1_89, %c0_90, %c0_91] : memref<9x1x256xf32, #tpu.memory_space<vmem>>, vector<1x1x256xf32>
    %106 = vector.shape_cast %105 : vector<1x1x256xf32> to vector<1x256xf32>
    %107 = vector.broadcast %106 : vector<1x256xf32> to vector<8x256xf32>
    %108 = arith.mulf %104, %107 : vector<8x256xf32>
    %c1_92 = arith.constant 1 : index
    %c0_93 = arith.constant 0 : index
    %c0_94 = arith.constant 0 : index
    %109 = vector.load %arg3[%c1_92, %c0_93, %c0_94] : memref<9x8x8xf32, #tpu.memory_space<vmem>>, vector<1x8x8xf32>
    %110 = vector.shape_cast %109 : vector<1x8x8xf32> to vector<8x8xf32>
    %cst_95 = arith.constant dense<0.000000e+00> : vector<8x256xf32>
    %111 = tpu.matmul %110, %108, %cst_95 {dimension_numbers = #tpu.dot_dimension_numbers<[1], [0], [0], [1], [0, 0, 1, 1], [], []>} : vector<8x8xf32>, vector<8x256xf32>, vector<8x256xf32> -> vector<8x256xf32>
    %112 = arith.addf %102, %111 : vector<8x256xf32>
    %c0_96 = arith.constant 0 : index
    %c0_97 = arith.constant 0 : index
    %113 = vector.load %arg8[%c0_96, %c0_97] : memref<8x256xf32, #tpu.memory_space<vmem>>, vector<8x256xf32>
    %c15_i32_98 = arith.constant 15 : i32
    %114 = tpu.dynamic_rotate %113 by %c15_i32_98 dim 1 : vector<8x256xf32>, i32 -> vector<8x256xf32>
    %c2_99 = arith.constant 2 : index
    %c0_100 = arith.constant 0 : index
    %c0_101 = arith.constant 0 : index
    %115 = vector.load %arg6[%c2_99, %c0_100, %c0_101] : memref<9x1x256xf32, #tpu.memory_space<vmem>>, vector<1x1x256xf32>
    %116 = vector.shape_cast %115 : vector<1x1x256xf32> to vector<1x256xf32>
    %117 = vector.broadcast %116 : vector<1x256xf32> to vector<8x256xf32>
    %118 = arith.mulf %114, %117 : vector<8x256xf32>
    %c2_102 = arith.constant 2 : index
    %c0_103 = arith.constant 0 : index
    %c0_104 = arith.constant 0 : index
    %119 = vector.load %arg3[%c2_102, %c0_103, %c0_104] : memref<9x8x8xf32, #tpu.memory_space<vmem>>, vector<1x8x8xf32>
    %120 = vector.shape_cast %119 : vector<1x8x8xf32> to vector<8x8xf32>
    %cst_105 = arith.constant dense<0.000000e+00> : vector<8x256xf32>
    %121 = tpu.matmul %120, %118, %cst_105 {dimension_numbers = #tpu.dot_dimension_numbers<[1], [0], [0], [1], [0, 0, 1, 1], [], []>} : vector<8x8xf32>, vector<8x256xf32>, vector<8x256xf32> -> vector<8x256xf32>
    %122 = arith.addf %112, %121 : vector<8x256xf32>
    %c0_106 = arith.constant 0 : index
    %c0_107 = arith.constant 0 : index
    %123 = vector.load %arg8[%c0_106, %c0_107] : memref<8x256xf32, #tpu.memory_space<vmem>>, vector<8x256xf32>
    %c1_i32_108 = arith.constant 1 : i32
    %124 = tpu.dynamic_rotate %123 by %c1_i32_108 dim 1 : vector<8x256xf32>, i32 -> vector<8x256xf32>
    %c3_109 = arith.constant 3 : index
    %c0_110 = arith.constant 0 : index
    %c0_111 = arith.constant 0 : index
    %125 = vector.load %arg6[%c3_109, %c0_110, %c0_111] : memref<9x1x256xf32, #tpu.memory_space<vmem>>, vector<1x1x256xf32>
    %126 = vector.shape_cast %125 : vector<1x1x256xf32> to vector<1x256xf32>
    %127 = vector.broadcast %126 : vector<1x256xf32> to vector<8x256xf32>
    %128 = arith.mulf %124, %127 : vector<8x256xf32>
    %c3_112 = arith.constant 3 : index
    %c0_113 = arith.constant 0 : index
    %c0_114 = arith.constant 0 : index
    %129 = vector.load %arg3[%c3_112, %c0_113, %c0_114] : memref<9x8x8xf32, #tpu.memory_space<vmem>>, vector<1x8x8xf32>
    %130 = vector.shape_cast %129 : vector<1x8x8xf32> to vector<8x8xf32>
    %cst_115 = arith.constant dense<0.000000e+00> : vector<8x256xf32>
    %131 = tpu.matmul %130, %128, %cst_115 {dimension_numbers = #tpu.dot_dimension_numbers<[1], [0], [0], [1], [0, 0, 1, 1], [], []>} : vector<8x8xf32>, vector<8x256xf32>, vector<8x256xf32> -> vector<8x256xf32>
    %132 = arith.addf %122, %131 : vector<8x256xf32>
    %c0_116 = arith.constant 0 : index
    %c0_117 = arith.constant 0 : index
    %133 = vector.load %arg8[%c0_116, %c0_117] : memref<8x256xf32, #tpu.memory_space<vmem>>, vector<8x256xf32>
    %c4_118 = arith.constant 4 : index
    %c0_119 = arith.constant 0 : index
    %c0_120 = arith.constant 0 : index
    %134 = vector.load %arg6[%c4_118, %c0_119, %c0_120] : memref<9x1x256xf32, #tpu.memory_space<vmem>>, vector<1x1x256xf32>
    %135 = vector.shape_cast %134 : vector<1x1x256xf32> to vector<1x256xf32>
    %136 = vector.broadcast %135 : vector<1x256xf32> to vector<8x256xf32>
    %137 = arith.mulf %133, %136 : vector<8x256xf32>
    %c4_121 = arith.constant 4 : index
    %c0_122 = arith.constant 0 : index
    %c0_123 = arith.constant 0 : index
    %138 = vector.load %arg3[%c4_121, %c0_122, %c0_123] : memref<9x8x8xf32, #tpu.memory_space<vmem>>, vector<1x8x8xf32>
    %139 = vector.shape_cast %138 : vector<1x8x8xf32> to vector<8x8xf32>
    %cst_124 = arith.constant dense<0.000000e+00> : vector<8x256xf32>
    %140 = tpu.matmul %139, %137, %cst_124 {dimension_numbers = #tpu.dot_dimension_numbers<[1], [0], [0], [1], [0, 0, 1, 1], [], []>} : vector<8x8xf32>, vector<8x256xf32>, vector<8x256xf32> -> vector<8x256xf32>
    %141 = arith.addf %132, %140 : vector<8x256xf32>
    %c0_125 = arith.constant 0 : index
    %c0_126 = arith.constant 0 : index
    %142 = vector.load %arg8[%c0_125, %c0_126] : memref<8x256xf32, #tpu.memory_space<vmem>>, vector<8x256xf32>
    %c255_i32_127 = arith.constant 255 : i32
    %143 = tpu.dynamic_rotate %142 by %c255_i32_127 dim 1 : vector<8x256xf32>, i32 -> vector<8x256xf32>
    %c5_128 = arith.constant 5 : index
    %c0_129 = arith.constant 0 : index
    %c0_130 = arith.constant 0 : index
    %144 = vector.load %arg6[%c5_128, %c0_129, %c0_130] : memref<9x1x256xf32, #tpu.memory_space<vmem>>, vector<1x1x256xf32>
    %145 = vector.shape_cast %144 : vector<1x1x256xf32> to vector<1x256xf32>
    %146 = vector.broadcast %145 : vector<1x256xf32> to vector<8x256xf32>
    %147 = arith.mulf %143, %146 : vector<8x256xf32>
    %c5_131 = arith.constant 5 : index
    %c0_132 = arith.constant 0 : index
    %c0_133 = arith.constant 0 : index
    %148 = vector.load %arg3[%c5_131, %c0_132, %c0_133] : memref<9x8x8xf32, #tpu.memory_space<vmem>>, vector<1x8x8xf32>
    %149 = vector.shape_cast %148 : vector<1x8x8xf32> to vector<8x8xf32>
    %cst_134 = arith.constant dense<0.000000e+00> : vector<8x256xf32>
    %150 = tpu.matmul %149, %147, %cst_134 {dimension_numbers = #tpu.dot_dimension_numbers<[1], [0], [0], [1], [0, 0, 1, 1], [], []>} : vector<8x8xf32>, vector<8x256xf32>, vector<8x256xf32> -> vector<8x256xf32>
    %151 = arith.addf %141, %150 : vector<8x256xf32>
    %c0_135 = arith.constant 0 : index
    %c0_136 = arith.constant 0 : index
    %152 = vector.load %arg8[%c0_135, %c0_136] : memref<8x256xf32, #tpu.memory_space<vmem>>, vector<8x256xf32>
    %c241_i32_137 = arith.constant 241 : i32
    %153 = tpu.dynamic_rotate %152 by %c241_i32_137 dim 1 : vector<8x256xf32>, i32 -> vector<8x256xf32>
    %c6_138 = arith.constant 6 : index
    %c0_139 = arith.constant 0 : index
    %c0_140 = arith.constant 0 : index
    %154 = vector.load %arg6[%c6_138, %c0_139, %c0_140] : memref<9x1x256xf32, #tpu.memory_space<vmem>>, vector<1x1x256xf32>
    %155 = vector.shape_cast %154 : vector<1x1x256xf32> to vector<1x256xf32>
    %156 = vector.broadcast %155 : vector<1x256xf32> to vector<8x256xf32>
    %157 = arith.mulf %153, %156 : vector<8x256xf32>
    %c6_141 = arith.constant 6 : index
    %c0_142 = arith.constant 0 : index
    %c0_143 = arith.constant 0 : index
    %158 = vector.load %arg3[%c6_141, %c0_142, %c0_143] : memref<9x8x8xf32, #tpu.memory_space<vmem>>, vector<1x8x8xf32>
    %159 = vector.shape_cast %158 : vector<1x8x8xf32> to vector<8x8xf32>
    %cst_144 = arith.constant dense<0.000000e+00> : vector<8x256xf32>
    %160 = tpu.matmul %159, %157, %cst_144 {dimension_numbers = #tpu.dot_dimension_numbers<[1], [0], [0], [1], [0, 0, 1, 1], [], []>} : vector<8x8xf32>, vector<8x256xf32>, vector<8x256xf32> -> vector<8x256xf32>
    %161 = arith.addf %151, %160 : vector<8x256xf32>
    %c0_145 = arith.constant 0 : index
    %c0_146 = arith.constant 0 : index
    %162 = vector.load %arg8[%c0_145, %c0_146] : memref<8x256xf32, #tpu.memory_space<vmem>>, vector<8x256xf32>
    %c240_i32_147 = arith.constant 240 : i32
    %163 = tpu.dynamic_rotate %162 by %c240_i32_147 dim 1 : vector<8x256xf32>, i32 -> vector<8x256xf32>
    %c7_148 = arith.constant 7 : index
    %c0_149 = arith.constant 0 : index
    %c0_150 = arith.constant 0 : index
    %164 = vector.load %arg6[%c7_148, %c0_149, %c0_150] : memref<9x1x256xf32, #tpu.memory_space<vmem>>, vector<1x1x256xf32>
    %165 = vector.shape_cast %164 : vector<1x1x256xf32> to vector<1x256xf32>
    %166 = vector.broadcast %165 : vector<1x256xf32> to vector<8x256xf32>
    %167 = arith.mulf %163, %166 : vector<8x256xf32>
    %c7_151 = arith.constant 7 : index
    %c0_152 = arith.constant 0 : index
    %c0_153 = arith.constant 0 : index
    %168 = vector.load %arg3[%c7_151, %c0_152, %c0_153] : memref<9x8x8xf32, #tpu.memory_space<vmem>>, vector<1x8x8xf32>
    %169 = vector.shape_cast %168 : vector<1x8x8xf32> to vector<8x8xf32>
    %cst_154 = arith.constant dense<0.000000e+00> : vector<8x256xf32>
    %170 = tpu.matmul %169, %167, %cst_154 {dimension_numbers = #tpu.dot_dimension_numbers<[1], [0], [0], [1], [0, 0, 1, 1], [], []>} : vector<8x8xf32>, vector<8x256xf32>, vector<8x256xf32> -> vector<8x256xf32>
    %171 = arith.addf %161, %170 : vector<8x256xf32>
    %c0_155 = arith.constant 0 : index
    %c0_156 = arith.constant 0 : index
    %172 = vector.load %arg8[%c0_155, %c0_156] : memref<8x256xf32, #tpu.memory_space<vmem>>, vector<8x256xf32>
    %c239_i32_157 = arith.constant 239 : i32
    %173 = tpu.dynamic_rotate %172 by %c239_i32_157 dim 1 : vector<8x256xf32>, i32 -> vector<8x256xf32>
    %c8_158 = arith.constant 8 : index
    %c0_159 = arith.constant 0 : index
    %c0_160 = arith.constant 0 : index
    %174 = vector.load %arg6[%c8_158, %c0_159, %c0_160] : memref<9x1x256xf32, #tpu.memory_space<vmem>>, vector<1x1x256xf32>
    %175 = vector.shape_cast %174 : vector<1x1x256xf32> to vector<1x256xf32>
    %176 = vector.broadcast %175 : vector<1x256xf32> to vector<8x256xf32>
    %177 = arith.mulf %173, %176 : vector<8x256xf32>
    %c8_161 = arith.constant 8 : index
    %c0_162 = arith.constant 0 : index
    %c0_163 = arith.constant 0 : index
    %178 = vector.load %arg3[%c8_161, %c0_162, %c0_163] : memref<9x8x8xf32, #tpu.memory_space<vmem>>, vector<1x8x8xf32>
    %179 = vector.shape_cast %178 : vector<1x8x8xf32> to vector<8x8xf32>
    %cst_164 = arith.constant dense<0.000000e+00> : vector<8x256xf32>
    %180 = tpu.matmul %179, %177, %cst_164 {dimension_numbers = #tpu.dot_dimension_numbers<[1], [0], [0], [1], [0, 0, 1, 1], [], []>} : vector<8x8xf32>, vector<8x256xf32>, vector<8x256xf32> -> vector<8x256xf32>
    %181 = arith.addf %171, %180 : vector<8x256xf32>
    %c0_165 = arith.constant 0 : index
    %c0_166 = arith.constant 0 : index
    %182 = vector.load %arg5[%c0_165, %c0_166] : memref<8x1xf32, #tpu.memory_space<vmem>>, vector<8x1xf32>
    %183 = vector.broadcast %182 : vector<8x1xf32> to vector<8x256xf32>
    %184 = arith.addf %181, %183 : vector<8x256xf32>
    %c0_167 = arith.constant 0 : index
    %c0_168 = arith.constant 0 : index
    %185 = vector.load %arg1[%c0_167, %c0_168] : memref<8x256xf32, #tpu.memory_space<vmem>>, vector<8x256xf32>
    %186 = arith.addf %184, %185 : vector<8x256xf32>
    %cst_169 = arith.constant 0.000000e+00 : f32
    %187 = vector.broadcast %cst_169 : f32 to vector<8x256xf32>
    %188 = arith.maximumf %186, %187 : vector<8x256xf32>
    %c0_170 = arith.constant 0 : index
    %c0_171 = arith.constant 0 : index
    %189 = vector.load %arg7[%c0_170, %c0_171] : memref<8x256xf32, #tpu.memory_space<vmem>>, vector<8x256xf32>
    tpu.vector_store %arg7[%c0_170, %c0_171], %188 {strides = array<i32>} : memref<8x256xf32, #tpu.memory_space<vmem>>, vector<8x256xf32>,
    return
  }
  func.func @transform_0(%arg0: i32) -> (i32, i32) {
    %c0_i32 = arith.constant 0 : i32
    %c0_i32_0 = arith.constant 0 : i32
    return %c0_i32, %arg0 : i32, i32
  }
  func.func @transform_1(%arg0: i32) -> (i32, i32, i32) {
    %c0_i32 = arith.constant 0 : i32
    %c0_i32_0 = arith.constant 0 : i32
    %c0_i32_1 = arith.constant 0 : i32
    %c0_i32_2 = arith.constant 0 : i32
    return %c0_i32, %c0_i32_0, %c0_i32_1 : i32, i32, i32
  }
  func.func @transform_2(%arg0: i32) -> (i32, i32, i32) {
    %c0_i32 = arith.constant 0 : i32
    %c0_i32_0 = arith.constant 0 : i32
    %c0_i32_1 = arith.constant 0 : i32
    %c0_i32_2 = arith.constant 0 : i32
    return %c0_i32, %c0_i32_0, %c0_i32_1 : i32, i32, i32
  }
  func.func @transform_3(%arg0: i32) -> (i32, i32) {
    %c0_i32 = arith.constant 0 : i32
    %c0_i32_0 = arith.constant 0 : i32
    %c0_i32_1 = arith.constant 0 : i32
    return %c0_i32, %c0_i32_0 : i32, i32
  }
  func.func @transform_4(%arg0: i32) -> (i32, i32) {
    %c0_i32 = arith.constant 0 : i32
    %c0_i32_0 = arith.constant 0 : i32
    %c0_i32_1 = arith.constant 0 : i32
    return %c0_i32, %c0_i32_0 : i32, i32
  }
  func.func @transform_5(%arg0: i32) -> (i32, i32, i32) {
    %c0_i32 = arith.constant 0 : i32
    %c0_i32_0 = arith.constant 0 : i32
    %c0_i32_1 = arith.constant 0 : i32
    %c0_i32_2 = arith.constant 0 : i32
    return %c0_i32, %c0_i32_0, %c0_i32_1 : i32, i32, i32
  }
  func.func @transform_6(%arg0: i32) -> (i32, i32) {
    %c0_i32 = arith.constant 0 : i32
    %c0_i32_0 = arith.constant 0 : i32
    return %c0_i32, %arg0 : i32, i32
  }
}

</mosaic_0001>

<bundles_post_ra>
// kernel: tpu_custom_call.1
= control target key start
LH: loop header
LB: loop body
LE: loop exit
PB: predicated region body
PF: predicated region fallthrough
CT: control target
= control target key end

     0   :  { %11 = vsyncpa [#allocation4], 0  ;;  %s2769_s0 = inlined_call_operand.vmem [shape: f32[8,512], index: 0, kind: input, shape index: {}]   ;;  %s2770_s1 = inlined_call_operand.vmem [shape: f32[9,8,8], index: 1, kind: input, shape index: {}]   ;;  %s2771_s2 = inlined_call_operand.vmem [shape: f32[9,8,8], index: 2, kind: input, shape index: {}]   ;;  %s2772_s3 = inlined_call_operand.vmem [shape: f32[8,1], index: 3, kind: input, shape index: {}]   ;;  %s2773_s4 = inlined_call_operand.vmem [shape: f32[8,1], index: 4, kind: input, shape index: {}]   ;;  %s2774_s5 = inlined_call_operand.vmem [shape: f32[9,1,256], index: 5, kind: input, shape index: {}]   ;;  %s2775_s6 = inlined_call_operand.hbm [shape: f32[8,512], index: 6, kind: output, shape index: {}]  }
   0x1   :  { %13 = vsyncpa [#allocation4 + $0x1], 0  ;;  %s2341_s21 = smov 0   ;;  %s2343_s22 = smov 0  }
   0x2   :  { %s2345_s23 = smov 0   ;;  %s2347_s24 = smov 0  }
   0x3 LB: > { %s2362_s25 = sadd.s32 4294967295, %s2293_s24   ;;  %s2120_s26 = sadd.s32 4294967294, %s2293_s24   ;;  %s2293_s24 = sphi %s2347_s24, %s2784_s24   ;;  %s2289_s23 = sphi %s2345_s23, %s2783_s23   ;;  %s2285_s22 = sphi %s2343_s22, %s2782_s22   ;;  %s2281_s21 = sphi %s2341_s21, %s2781_s21  }
   0x4   : > { %s2366_s27 = sadd.s32 1, %s2293_s24   ;;  %s157_s28 = sadd.s32 1, %s2289_s23 }
   0x5   : > { %s154_s29 = ssub.s32 %s2293_s24, %s2366_s27  ;;  %p167_p0 = scmp.ne.s32.totalorder %s2289_s23, %s2285_s22 }
   0x6   : > { %p155_p1 = scmp.eq.s32.totalorder %s154_s29, 0  ;;  %p168_p2 = scmp.eq.s32.totalorder %s2362_s25, 1 }
   0x7   : > { %p173_p3 = scmp.ne.s32.totalorder %s2285_s22, %s2281_s21  ;;  %p174_p4 = scmp.eq.s32.totalorder %s2120_s26, 1 }
   0x8   : > { %s2377_s30 = scalar_select %p155_p1, %s2289_s23, %s157_s28  }
   0x9   : > { %p2379_p5 = por %p168_p2, %p167_p0  ;;  %p2383_p6 = por %p174_p4, %p173_p3 }
   0xa   : > { %p2123_p7 = scmp.ge.s32.totalorder %s2293_s24, 1  ;;  %p216_p8 = scmp.lt.s32.totalorder %s2293_s24, 3 }
   0xc   : > { %p217_p9 = pnand %p2123_p7, %p216_p8 }
   0xd   : > { %s2125_s9 = sshll.u32 (!%p217_p9), %s2362_s25, 1  ;;  %s2296_s14 = smov (!%p217_p9), 17  }
   0xe   : > { %220 = sbr.rel (%p217_p9) target bundleno = 738 (0x2e2), region = 44  ;;  %p247_p10 = scmp.lt.s32.totalorder (!%p217_p9), %s2125_s9, 3 }
   0xf   : > { %s2297_s15 = smov (!%p217_p9), 16   ;;  %s2298_s16 = smov (!%p217_p9), 15  }
  0x10   : > { %s2299_s17 = smov (!%p217_p9), 1   ;;  %s2300_s18 = smov (!%p217_p9), 127  }
  0x11   : > { %s2301_s19 = smov (!%p217_p9), 113   ;;  %s2303_s20 = smov (!%p217_p9), 112  }
  0x12   : > { %s2776_s26 = smov (!%p217_p9), 111   ;;  %s243_s28 = sand.u32 (!%p217_p9), 1, %s2285_s22  }
  0x13   : > { %s2786_s9 = smov (!%p247_p10, %s2125_s9), 3  ;;  %v2295_v0 = vmov 0.0   ;;  %v2302_v3 = vmov 0   ;;  %v1145_v4 = vld [vmem:[%s2772_s3] sm:$0xff]  ;;  %v259_v5 = vlaneseq  ;;  %v2137_v15 = vld [vmem:[%s2774_s5 + $0x8] sm:$0x3] }
  0x14   : > { %s2126_s10 = sshll.u32 %s2786_s9, 3  ;;  %371 = vmatprep.mubr.f32.mxu0 %v2295_v0  ;;  %445 = vmatprep.mubr.f32.mxu1 %v2295_v0  ;;  %v264_v10 = vld [vmem:[%s2774_s5] sm:$0x3]  ;;  %v2127_v11 = vld [vmem:[%s2774_s5 + $0x2] sm:$0x3]  ;;  %v2128_v34 = vld [vmem:[%s2770_s1 + $0x8] sm:$0xff] }
  0x15   : > { %s250_s13 = scalar_lea.vmem %s2769_s0, %s2126_s10  ;;  %2232 = vset.pattern.permute.xlu0 %v2302_v3  ;;  %v267_v6 = vshrl.u32 %v259_v5, 7  ;;  %v2434_v7 = vand.u32 127, %v259_v5  ;;  %v2131_v14 = vld [vmem:[%s2774_s5 + $0x4] sm:$0x3]  ;;  %v2134_v29 = vld [vmem:[%s2774_s5 + $0x6] sm:$0x3] }
  0x16   : > { %v2394_v1 = vld [vmem:[%s250_s13] sm:$0xff]  ;;  %v2401_v2 = vld [vmem:[%s250_s13 + $0x8] sm:$0xff]  ;;  %vm303_vm3 = vcmask 64512   ;;  %v2132_v47 = vld [vmem:[%s2770_s1 + $0x10] sm:$0xff]  ;;  %s2124_s29 = sshll.u32 %s243_s28, 4 }
  0x17   : > { %255 = vrot.lane.b32.xlu1 %v2394_v1, %s2296_s14  ;;  %279 = vrot.lane.b32.xlu0 %v2394_v1, %s2297_s15  ;;  %v2436_v8 = vsub.s32 0, %v267_v6  ;;  %v2438_v9 = vsub.s32 1, %v267_v6  ;;  %vm261_vm0 = vcmp.lt.s32.totalorder %v2434_v7, 17  ;;  %vm283_vm1 = vcmp.lt.s32.totalorder %v2434_v7, 16  ;;  %v278_v35 = vld [vmem:[%s2770_s1] sm:$0xff]  ;;  %v2135_v58 = vld [vmem:[%s2770_s1 + $0x18] sm:$0xff] }
  0x18   : > { %vm456_vm2 = vcmp.lt.s32.totalorder %v2434_v7, 15  ;;  %vm556_vm4 = vcmp.lt.s32.totalorder %v2434_v7, 1  ;;  %v2140_v45 = vld [vmem:[%s2774_s5 + $0xa] sm:$0x3]  ;;  %vm749_vm5 = vcmp.lt.s32.totalorder %v2434_v7, 127  ;;  %v2138_v59 = vld [vmem:[%s2770_s1 + $0x20] sm:$0xff] }
  0x19   : > { %v273_v16 = vrot.slane %v264_v10, %v2438_v9  ;;  %v296_v17 = vrot.slane %v2127_v11, %v2438_v9  ;;  %v292_v18 = vrot.slane %v2127_v11, %v2436_v8  ;;  %v269_v19 = vrot.slane %v264_v10, %v2436_v8  ;;  %v2143_v57 = vld [vmem:[%s2774_s5 + $0xc] sm:$0x3]  ;;  %v2146_v11 = vld [vmem:[%s2774_s5 + $0xe] sm:$0x3]  ;;  %s245_s9 = scalar_lea.vmem [#allocation3], %s2124_s29 }
  0x1a   : > { %v465_v22 = vrot.slane %v2131_v14, %v2436_v8  ;;  %v469_v23 = vrot.slane %v2131_v14, %v2438_v9  ;;  %v662_v24 = vrot.slane %v2137_v15, %v2438_v9  ;;  %v658_v36 = vrot.slane %v2137_v15, %v2436_v8  ;;  %v2141_v10 = vld [vmem:[%s2770_s1 + $0x28] sm:$0xff]  ;;  %s2061_s10 = sshll.u32 %s245_s9, 4  ;;  %s2062_s10 = int_to_ptr.vmem [resolvable:$true] %s2061_s10 }
  0x1b   : > { %257 = vrot.lane.b32.xlu1 %v2401_v2, %s2296_s14  ;;  %281 = vrot.lane.b32.xlu0 %v2401_v2, %s2297_s15  ;;  %v565_v39 = vrot.slane %v2134_v29, %v2436_v8  ;;  %v569_v42 = vrot.slane %v2134_v29, %v2438_v9  ;;  %v758_v53 = vrot.slane %v2140_v45, %v2436_v8  ;;  %vm849_vm6 = vcmp.lt.s32.totalorder %v2434_v7, 113 }
  0x1c   : > { %v666_v46 = vmul.f32 %v662_v24, %v2401_v2  ;;  %v665_v48 = vmul.f32 %v658_v36, %v2394_v1  ;;  %v762_v56 = vrot.slane %v2140_v45, %v2438_v9  ;;  %v858_v3 = vrot.slane %v2143_v57, %v2436_v8 }
  0x1d   : > { %v862_v6 = vrot.slane %v2143_v57, %v2438_v9  ;;  %vm949_vm7 = vcmp.lt.s32.totalorder %v2434_v7, 112  ;;  %vm1049_vm8 = vcmp.lt.s32.totalorder %v2434_v7, 111 }
  0x1f   : > { %454 = vrot.lane.b32.xlu1 %v2401_v2, %s2298_s16  ;;  %452 = vrot.lane.b32.xlu0 %v2394_v1, %s2298_s16 }
  0x23   : > { %554 = vrot.lane.b32.xlu1 %v2401_v2, %s2299_s17  ;;  %552 = vrot.lane.b32.xlu0 %v2394_v1, %s2299_s17 }
  0x27   : > { %747 = vrot.lane.b32.xlu1 %v2401_v2, %s2300_s18  ;;  %745 = vrot.lane.b32.xlu0 %v2394_v1, %s2300_s18 }
  0x2b   : > { %847 = vrot.lane.b32.xlu1 %v2401_v2, %s2301_s19  ;;  %845 = vrot.lane.b32.xlu0 %v2394_v1, %s2301_s19 }
  0x2f   : > { %947 = vrot.lane.b32.xlu1 %v2401_v2, %s2303_s20  ;;  %945 = vrot.lane.b32.xlu0 %v2394_v1, %s2303_s20 }
  0x33   : > { %1047 = vrot.lane.b32.xlu1 %v2401_v2, %s2776_s26  ;;  %1045 = vrot.lane.b32.xlu0 %v2394_v1, %s2776_s26  ;;  %s2182_s26 = sshll.u32 %s2362_s25, 8  ;;  %s2305_s25 = smov [#allocation3]  }
  0x34   : > { %s2237_s12 = sshll.u32 %s2305_s25, 4  ;;  %s2238_s12 = int_to_ptr.vmem [resolvable:$false] %s2237_s12 }
  0x35   : > { %p2240_p0 = scmp.lt.s32.totalorder %s2062_s10, %s2238_s12 }
  0x37   : > { %1148 = vperm.xlu0 %2232, %v1145_v4  }
  0x89   : > { %v256_v12 = vpop.permute.xlu1 %255  ;;  %v280_v13 = vpop.permute.xlu0 %279 }
  0x8d   : > { %v258_v20 = vpop.permute.xlu1 %257  ;;  %v282_v21 = vpop.permute.xlu0 %281 }
  0x8e   : > { %v263_v25 = vsel %vm261_vm0, %v258_v20, %v256_v12  ;;  %v285_v26 = vsel %vm283_vm1, %v282_v21, %v280_v13  ;;  %v262_v27 = vsel %vm261_vm0, %v256_v12, %v258_v20  ;;  %v284_v28 = vsel %vm283_vm1, %v280_v13, %v282_v21  ;;  %v2144_v20 = vld [vmem:[%s2770_s1 + $0x30] sm:$0xff] }
  0x8f   : > { %v277_v30 = vmul.f32 %v273_v16, %v262_v27  ;;  %v300_v31 = vmul.f32 %v296_v17, %v284_v28  ;;  %v299_v32 = vmul.f32 %v292_v18, %v285_v26  ;;  %v276_v33 = vmul.f32 %v269_v19, %v263_v25  ;;  %v2149_v21 = vld [vmem:[%s2774_s5 + $0x10] sm:$0x3] }
  0x90   : > { %v958_v18 = vrot.slane %v2146_v11, %v2436_v8  ;;  %v962_v19 = vrot.slane %v2146_v11, %v2438_v9  ;;  %v1058_v28 = vrot.slane %v2149_v21, %v2436_v8  ;;  %v1062_v29 = vrot.slane %v2149_v21, %v2438_v9 }
  0x91   : > { %411 = vmatprep.subr.mxu1 %v277_v30  ;;  %v455_v37 = vpop.permute.xlu1 %454  ;;  %337 = vmatprep.subr.mxu0 %v300_v31  ;;  %v453_v38 = vpop.permute.xlu0 %452  ;;  %v2147_v30 = vld [vmem:[%s2770_s1 + $0x38] sm:$0xff] }
  0x92   : > { %v457_v40 = vsel %vm456_vm2, %v453_v38, %v455_v37  ;;  %v458_v41 = vsel %vm456_vm2, %v455_v37, %v453_v38  ;;  %338 = vmatpush1.msra.mxu0 %v299_v32  ;;  %412 = vmatpush1.msra.mxu1 %v276_v33  ;;  %v2150_v37 = vld [vmem:[%s2770_s1 + $0x40] sm:$0xff] }
  0x93   : > { %v472_v43 = vmul.f32 %v465_v22, %v458_v41  ;;  %v473_v44 = vmul.f32 %v469_v23, %v457_v40  ;;  %2129 = vmatmul.mubr.msk.f32.vlgmr.msra.gmra.mxu0 %vm303_vm3, %v2128_v34  ;;  %2130 = vmatmul.mubr.msk.f32.vlgmr.msra.gmra.mxu1 %vm303_vm3, %v278_v35 }
  0x94   : > { %543 = vmatprep.mubr.f32.mxu0 %v2295_v0  ;;  %643 = vmatprep.mubr.f32.mxu1 %v2295_v0 }
  0x95   : > { %v555_v49 = vpop.permute.xlu1 %554  ;;  %509 = vmatprep.subr.mxu0 %v473_v44  ;;  %v553_v50 = vpop.permute.xlu0 %552 }
  0x96   : > { %v557_v51 = vsel %vm556_vm4, %v553_v50, %v555_v49  ;;  %v558_v52 = vsel %vm556_vm4, %v555_v49, %v553_v50  ;;  %510 = vmatpush1.msra.mxu0 %v472_v43 }
  0x97   : > { %v572_v54 = vmul.f32 %v565_v39, %v558_v52  ;;  %v573_v55 = vmul.f32 %v569_v42, %v557_v51  ;;  %2133 = vmatmul.mubr.msk.f32.vlgmr.msra.gmra.mxu0 %vm303_vm3, %v2132_v47  ;;  %702 = vmatprep.subr.mxu0 %v666_v46 }
  0x98   : > { %703 = vmatpush1.msra.mxu0 %v665_v48  ;;  %736 = vmatprep.mubr.f32.mxu0 %v2295_v0 }
  0x99   : > { %v748_v60 = vpop.permute.xlu1 %747  ;;  %609 = vmatprep.subr.mxu1 %v573_v55  ;;  %v746_v61 = vpop.permute.xlu0 %745 }
  0x9a   : > { %v750_v62 = vsel %vm749_vm5, %v746_v61, %v748_v60  ;;  %v751_v63 = vsel %vm749_vm5, %v748_v60, %v746_v61  ;;  %610 = vmatpush1.msra.mxu1 %v572_v54 }
  0x9b   : > { %v765_v4 = vmul.f32 %v758_v53, %v750_v62  ;;  %v766_v5 = vmul.f32 %v762_v56, %v751_v63  ;;  %2136 = vmatmul.mubr.msk.f32.vlgmr.msra.gmra.mxu1 %vm303_vm3, %v2135_v58  ;;  %2139 = vmatmul.mubr.msk.f32.vlgmr.msra.gmra.mxu0 %vm303_vm3, %v2138_v59 }
  0x9c   : > { %836 = vmatprep.mubr.f32.mxu1 %v2295_v0  ;;  %936 = vmatprep.mubr.f32.mxu0 %v2295_v0 }
  0x9d   : > { %v848_v12 = vpop.permute.xlu1 %847  ;;  %802 = vmatprep.subr.mxu1 %v766_v5  ;;  %v846_v13 = vpop.permute.xlu0 %845 }
  0x9e   : > { %v850_v14 = vsel %vm849_vm6, %v846_v13, %v848_v12  ;;  %v851_v15 = vsel %vm849_vm6, %v848_v12, %v846_v13  ;;  %803 = vmatpush1.msra.mxu1 %v765_v4 }
  0x9f   : > { %v865_v16 = vmul.f32 %v858_v3, %v850_v14  ;;  %v866_v17 = vmul.f32 %v862_v6, %v851_v15  ;;  %2142 = vmatmul.mubr.msk.f32.vlgmr.msra.gmra.mxu1 %vm303_vm3, %v2141_v10 }
  0xa0   : > { %1036 = vmatprep.mubr.f32.mxu1 %v2295_v0 }
  0xa1   : > { %v948_v22 = vpop.permute.xlu1 %947  ;;  %v946_v23 = vpop.permute.xlu0 %945  ;;  %902 = vmatprep.subr.mxu0 %v866_v17 }
  0xa2   : > { %v950_v24 = vsel %vm949_vm7, %v946_v23, %v948_v22  ;;  %v951_v25 = vsel %vm949_vm7, %v948_v22, %v946_v23  ;;  %903 = vmatpush1.msra.mxu0 %v865_v16 }
  0xa3   : > { %v965_v26 = vmul.f32 %v958_v18, %v950_v24  ;;  %v966_v27 = vmul.f32 %v962_v19, %v951_v25  ;;  %2145 = vmatmul.mubr.msk.f32.vlgmr.msra.gmra.mxu0 %vm303_vm3, %v2144_v20  ;;  %v2030_v19 = vld [vmem:[%s2773_s4] sm:$0xff] }
  0xa4   : > { %1136 = vmatprep.mubr.f32.mxu0 %v2295_v0  ;;  %v2152_v20 = vld [vmem:[%s2774_s5 + $0x2] sm:$0x3]  ;;  %v1165_v25 = vld [vmem:[%s2774_s5] sm:$0x3] }
  0xa5   : > { %v1048_v31 = vpop.permute.xlu1 %1047  ;;  %1002 = vmatprep.subr.mxu1 %v966_v27  ;;  %v1046_v32 = vpop.permute.xlu0 %1045  ;;  %v1191_v23 = vrot.slane %v2152_v20, %v2436_v8  ;;  %v1195_v24 = vrot.slane %v2152_v20, %v2438_v9 }
  0xa6   : > { %v1050_v33 = vsel %vm1049_vm8, %v1046_v32, %v1048_v31  ;;  %v1051_v34 = vsel %vm1049_vm8, %v1048_v31, %v1046_v32  ;;  %1003 = vmatpush1.msra.mxu1 %v965_v26  ;;  %v1170_v32 = vrot.slane %v1165_v25, %v2436_v8 }
  0xa7   : > { %v1065_v35 = vmul.f32 %v1058_v28, %v1050_v33  ;;  %v1066_v36 = vmul.f32 %v1062_v29, %v1051_v34  ;;  %2148 = vmatmul.mubr.msk.f32.vlgmr.msra.gmra.mxu1 %vm303_vm3, %v2147_v30  ;;  %v1174_v33 = vrot.slane %v1165_v25, %v2438_v9  ;;  %v2156_v34 = vld [vmem:[%s2774_s5 + $0x4] sm:$0x3] }
  0xa8   : > { %1269 = vmatprep.mubr.f32.mxu1 %v2295_v0 }
  0xa9   : > { %1102 = vmatprep.subr.mxu0 %v1066_v36 }
  0xaa   : > { %1103 = vmatpush1.msra.mxu0 %v1065_v35  ;;  %v2153_v35 = vld [vmem:[%s2771_s2 + $0x8] sm:$0xff] }
  0xab   : > { %2151 = vmatmul.mubr.msk.f32.vlgmr.msra.gmra.mxu0 %vm303_vm3, %v2150_v37 }
  0xac   : > { %1343 = vmatprep.mubr.f32.mxu0 %v2295_v0 }
  0xb2   : > { %v1149_v10 = vpop.permute.xlu0 %1148 }
 0x153   : > { %v373_v38 = vpop.f32.mrf.mxu0  ;;  %v447_v39 = vpop.f32.mrf.mxu1 }
 0x154   : > { %v448_v40 = vadd.f32 %v447_v39, %v373_v38 }
 0x155   : > { %v375_v41 = vpop.f32.mrf.mxu0  ;;  %v449_v42 = vpop.f32.mrf.mxu1 }
 0x156   : > { %v450_v43 = vadd.f32 %v449_v42, %v375_v41  ;;  %v1361_v42 = vrot.slane %v2156_v34, %v2436_v8 }
 0x157   : > { %v545_v44 = vpop.f32.mrf.mxu0 }
 0x158   : > { %v550_v45 = vadd.f32 %v545_v44, %v448_v40  ;;  %v2162_v44 = vld [vmem:[%s2774_s5 + $0x8] sm:$0x3] }
 0x159   : > { %v547_v46 = vpop.f32.mrf.mxu0 }
 0x15a   : > { %v551_v47 = vadd.f32 %v547_v46, %v450_v43  ;;  %v1365_v43 = vrot.slane %v2156_v34, %v2438_v9  ;;  %v1179_v46 = vld [vmem:[%s2771_s2] sm:$0xff] }
 0x15b   : > { %v645_v48 = vpop.f32.mrf.mxu1  ;;  %v738_v49 = vpop.f32.mrf.mxu0 }
 0x15c   : > { %v650_v50 = vadd.f32 %v645_v48, %v550_v45  ;;  %v2159_v45 = vld [vmem:[%s2774_s5 + $0x6] sm:$0x3]  ;;  %v1555_v48 = vrot.slane %v2162_v44, %v2438_v9 }
 0x15d   : > { %v647_v51 = vpop.f32.mrf.mxu1  ;;  %v740_v54 = vpop.f32.mrf.mxu0 }
 0x15e   : > { %v651_v52 = vadd.f32 %v647_v51, %v551_v47  ;;  %v743_v53 = vadd.f32 %v738_v49, %v650_v50  ;;  %v1551_v51 = vrot.slane %v2162_v44, %v2436_v8 }
 0x15f   : > { %v838_v55 = vpop.f32.mrf.mxu1 }
 0x160   : > { %v744_v56 = vadd.f32 %v740_v54, %v651_v52  ;;  %v843_v57 = vadd.f32 %v838_v55, %v743_v53  ;;  %v1459_v55 = vrot.slane %v2159_v45, %v2436_v8 }
 0x161   : > { %v840_v58 = vpop.f32.mrf.mxu1 }
 0x162   : > { %v844_v60 = vadd.f32 %v840_v58, %v744_v56  ;;  %v1463_v56 = vrot.slane %v2159_v45, %v2438_v9  ;;  %v2157_v58 = vld [vmem:[%s2771_s2 + $0x10] sm:$0xff]  ;;  %v2175_v45 = vld [vmem:[%s2771_s2 + $0x40] sm:$0xff] }
 0x163   : > { %v938_v59 = vpop.f32.mrf.mxu0 }
 0x164   : > { %v943_v61 = vadd.f32 %v938_v59, %v843_v57  ;;  %v2165_v57 = vld [vmem:[%s2774_s5 + $0xa] sm:$0x3] }
 0x165   : > { %v940_v62 = vpop.f32.mrf.mxu0 }
 0x166   : > { %v944_v4 = vadd.f32 %v940_v62, %v844_v60 }
 0x167   : > { %v1038_v63 = vpop.f32.mrf.mxu1 }
 0x168   : > { %v1043_v5 = vadd.f32 %v1038_v63, %v943_v61 }
 0x169   : > { %v1040_v3 = vpop.f32.mrf.mxu1 }
 0x16a   : > { %v1044_v11 = vadd.f32 %v1040_v3, %v944_v4  ;;  %v1649_v3 = vrot.slane %v2165_v57, %v2436_v8 }
 0x16b   : > { %v1138_v6 = vpop.f32.mrf.mxu0 }
 0x16c   : > { %v1143_v12 = vadd.f32 %v1138_v6, %v1043_v5  ;;  %v1653_v6 = vrot.slane %v2165_v57, %v2438_v9 }
 0x16d   : > { %v1140_v13 = vpop.f32.mrf.mxu0 }
 0x16e   : > { %v1151_v14 = vadd.f32 %v1149_v10, %v1143_v12  ;;  %v1144_v15 = vadd.f32 %v1140_v13, %v1044_v11  ;;  %v2160_v11 = vld [vmem:[%s2771_s2 + $0x18] sm:$0xff]  ;;  %v2163_v12 = vld [vmem:[%s2771_s2 + $0x20] sm:$0xff] }
 0x170   : > { %v2572_v16 = vmax.f32 %v1151_v14, 0.0  ;;  %v1152_v17 = vadd.f32 %v1149_v10, %v1144_v15  ;;  %v2168_v10 = vld [vmem:[%s2774_s5 + $0xc] sm:$0x3] }
 0x171   : > { %v1751_v20 = vrot.slane %v2168_v10, %v2438_v9 }
 0x172   : > { %1159 = vrot.lane.b32.xlu0 %v2572_v16, %s2296_s14  ;;  %1180 = vrot.lane.b32.xlu1 %v2572_v16, %s2297_s15  ;;  %v2578_v18 = vmax.f32 %v1152_v17, 0.0  ;;  %v1558_v63 = vmul.f32 %v1551_v51, %v2572_v16  ;;  %v1747_v17 = vrot.slane %v2168_v10, %v2436_v8 }
 0x174   : > { %v1559_v60 = vmul.f32 %v1555_v48, %v2578_v18 }
 0x176   : > { %1350 = vrot.lane.b32.xlu0 %v2572_v16, %s2298_s16  ;;  %1182 = vrot.lane.b32.xlu1 %v2578_v18, %s2297_s15  ;;  %s2780_s15 = smov 111  }
 0x17a   : > { %1448 = vrot.lane.b32.xlu0 %v2572_v16, %s2299_s17  ;;  %1161 = vrot.lane.b32.xlu1 %v2578_v18, %s2296_s14  ;;  %s2059_s14 = scalar_lea.hbm %s2775_s6, %s2182_s26 }
 0x17e   : > { %1638 = vrot.lane.b32.xlu0 %v2572_v16, %s2300_s18  ;;  %1352 = vrot.lane.b32.xlu1 %v2578_v18, %s2298_s16  ;;  %s2047_s16 = scalar_lea.sflag [#allocation4], %s243_s28 }
 0x182   : > { %1736 = vrot.lane.b32.xlu0 %v2572_v16, %s2301_s19  ;;  %1450 = vrot.lane.b32.xlu1 %v2578_v18, %s2299_s17  ;;  %s2233_s17 = scalar_lea.vmem %s2062_s10, 256 }
 0x183   : > { %p2234_p11 = scmp.ne.s32.totalorder %s2062_s10, %s2233_s17 }
 0x185   : > { %p2235_p12 = pnand %p2234_p11, %p2379_p5 }
 0x186   : > { %1834 = vrot.lane.b32.xlu0 %v2572_v16, %s2303_s20  ;;  %1640 = vrot.lane.b32.xlu1 %v2578_v18, %s2300_s18  ;;  %s2239_s18 = scalar_lea.vmem %s2238_s12, 512 }
 0x187   : > { %p2236_p13 = pneg %p2235_p12  ;;  %p2241_p1 = scmp.lt.s32.totalorder %s2239_s18, %s2233_s17 }
 0x189   : > { %p2242_p2 = por %p2241_p1, %p2240_p0 }
 0x18a   : > { %1932 = vrot.lane.b32.xlu0 %v2572_v16, %s2780_s15  ;;  %1738 = vrot.lane.b32.xlu1 %v2578_v18, %s2301_s19 }
 0x18b   : > { %p2243_p3 = pnand %p2242_p2, %p2236_p13 }
 0x18e   : > { %2033 = vperm.xlu0 %2232, %v2030_v19   ;;  %1836 = vrot.lane.b32.xlu1 %v2578_v18, %s2303_s20 }
 0x192   : > { %1934 = vrot.lane.b32.xlu1 %v2578_v18, %s2780_s15 }
 0x1e4   : > { %v1160_v21 = vpop.permute.xlu0 %1159  ;;  %v1181_v22 = vpop.permute.xlu1 %1180 }
 0x1e8   : > { %v1351_v26 = vpop.permute.xlu0 %1350  ;;  %v1183_v27 = vpop.permute.xlu1 %1182 }
 0x1e9   : > { %v1184_v28 = vsel %vm283_vm1, %v1181_v22, %v1183_v27  ;;  %v1185_v29 = vsel %vm283_vm1, %v1183_v27, %v1181_v22  ;;  %v2166_v22 = vld [vmem:[%s2771_s2 + $0x28] sm:$0xff] }
 0x1ea   : > { %v1198_v30 = vmul.f32 %v1191_v23, %v1185_v29  ;;  %v1199_v31 = vmul.f32 %v1195_v24, %v1184_v28 }
 0x1ec   : > { %v1449_v36 = vpop.permute.xlu0 %1448  ;;  %1235 = vmatprep.subr.mxu1 %v1199_v31  ;;  %v1162_v37 = vpop.permute.xlu1 %1161  ;;  %v2174_v31 = vld [vmem:[%s2774_s5 + $0x10] sm:$0x3] }
 0x1ed   : > { %v1163_v38 = vsel %vm261_vm0, %v1160_v21, %v1162_v37  ;;  %v1164_v39 = vsel %vm261_vm0, %v1162_v37, %v1160_v21  ;;  %1236 = vmatpush1.msra.mxu1 %v1198_v30  ;;  %v2171_v21 = vld [vmem:[%s2774_s5 + $0xe] sm:$0x3] }
 0x1ee   : > { %v1177_v40 = vmul.f32 %v1170_v32, %v1164_v39  ;;  %v1178_v41 = vmul.f32 %v1174_v33, %v1163_v38  ;;  %2154 = vmatmul.mubr.msk.f32.vlgmr.msra.gmra.mxu1 %vm303_vm3, %v2153_v35  ;;  %v1845_v29 = vrot.slane %v2171_v21, %v2436_v8  ;;  %v1849_v30 = vrot.slane %v2171_v21, %v2438_v9  ;;  %v2169_v32 = vld [vmem:[%s2771_s2 + $0x30] sm:$0xff] }
 0x1ef   : > { %1439 = vmatprep.mubr.f32.mxu1 %v2295_v0  ;;  %v1943_v38 = vrot.slane %v2174_v31, %v2436_v8  ;;  %v1947_v39 = vrot.slane %v2174_v31, %v2438_v9 }
 0x1f0   : > { %1309 = vmatprep.subr.mxu0 %v1178_v41  ;;  %v1353_v47 = vpop.permute.xlu1 %1352  ;;  %v1639_v52 = vpop.permute.xlu0 %1638 }
 0x1f1   : > { %v1354_v49 = vsel %vm456_vm2, %v1351_v26, %v1353_v47  ;;  %v1355_v50 = vsel %vm456_vm2, %v1353_v47, %v1351_v26  ;;  %1310 = vmatpush1.msra.mxu0 %v1177_v40  ;;  %v2172_v40 = vld [vmem:[%s2771_s2 + $0x38] sm:$0xff] }
 0x1f2   : > { %v1368_v53 = vmul.f32 %v1361_v42, %v1355_v50  ;;  %v1369_v54 = vmul.f32 %v1365_v43, %v1354_v49  ;;  %2155 = vmatmul.mubr.msk.f32.vlgmr.msra.gmra.mxu0 %vm303_vm3, %v1179_v46 }
 0x1f3   : > { %1537 = vmatprep.mubr.f32.mxu0 %v2295_v0 }
 0x1f4   : > { %1405 = vmatprep.subr.mxu1 %v1369_v54  ;;  %v1451_v59 = vpop.permute.xlu1 %1450  ;;  %v1737_v13 = vpop.permute.xlu0 %1736 }
 0x1f5   : > { %v1452_v61 = vsel %vm556_vm4, %v1449_v36, %v1451_v59  ;;  %v1453_v62 = vsel %vm556_vm4, %v1451_v59, %v1449_v36  ;;  %1406 = vmatpush1.msra.mxu1 %v1368_v53 }
 0x1f6   : > { %v1466_v4 = vmul.f32 %v1459_v55, %v1453_v62  ;;  %v1467_v5 = vmul.f32 %v1463_v56, %v1452_v61  ;;  %1595 = vmatprep.subr.mxu1 %v1559_v60  ;;  %2158 = vmatmul.mubr.msk.f32.vlgmr.msra.gmra.mxu1 %vm303_vm3, %v2157_v58 }
 0x1f7   : > { %1596 = vmatpush1.msra.mxu1 %v1558_v63  ;;  %1629 = vmatprep.mubr.f32.mxu1 %v2295_v0 }
 0x1f8   : > { %1503 = vmatprep.subr.mxu0 %v1467_v5  ;;  %v1641_v14 = vpop.permute.xlu1 %1640  ;;  %v1835_v26 = vpop.permute.xlu0 %1834 }
 0x1f9   : > { %v1642_v15 = vsel %vm749_vm5, %v1639_v52, %v1641_v14  ;;  %v1643_v16 = vsel %vm749_vm5, %v1641_v14, %v1639_v52  ;;  %1504 = vmatpush1.msra.mxu0 %v1466_v4 }
 0x1fa   : > { %v1656_v18 = vmul.f32 %v1649_v3, %v1642_v15  ;;  %v1657_v19 = vmul.f32 %v1653_v6, %v1643_v16  ;;  %2161 = vmatmul.mubr.msk.f32.vlgmr.msra.gmra.mxu0 %vm303_vm3, %v2160_v11  ;;  %2164 = vmatmul.mubr.msk.f32.vlgmr.msra.gmra.mxu1 %vm303_vm3, %v2163_v12 }
 0x1fb   : > { %1727 = vmatprep.mubr.f32.mxu0 %v2295_v0  ;;  %1825 = vmatprep.mubr.f32.mxu1 %v2295_v0 }
 0x1fc   : > { %1693 = vmatprep.subr.mxu0 %v1657_v19  ;;  %v1739_v23 = vpop.permute.xlu1 %1738  ;;  %v1933_v41 = vpop.permute.xlu0 %1932 }
 0x1fd   : > { %v1740_v24 = vsel %vm849_vm6, %v1737_v13, %v1739_v23  ;;  %v1741_v25 = vsel %vm849_vm6, %v1739_v23, %v1737_v13  ;;  %1694 = vmatpush1.msra.mxu0 %v1656_v18 }
 0x1fe   : > { %v1754_v27 = vmul.f32 %v1747_v17, %v1740_v24  ;;  %v1755_v28 = vmul.f32 %v1751_v20, %v1741_v25  ;;  %2167 = vmatmul.mubr.msk.f32.vlgmr.msra.gmra.mxu0 %vm303_vm3, %v2166_v22 }
 0x1ff   : > { %1923 = vmatprep.mubr.f32.mxu0 %v2295_v0 }
 0x200   : > { %v1837_v33 = vpop.permute.xlu1 %1836  ;;  %1791 = vmatprep.subr.mxu1 %v1755_v28 }
 0x201   : > { %v1838_v34 = vsel %vm949_vm7, %v1835_v26, %v1837_v33  ;;  %v1839_v35 = vsel %vm949_vm7, %v1837_v33, %v1835_v26  ;;  %1792 = vmatpush1.msra.mxu1 %v1754_v27 }
 0x202   : > { %v1852_v36 = vmul.f32 %v1845_v29, %v1838_v34  ;;  %v1853_v37 = vmul.f32 %v1849_v30, %v1839_v35  ;;  %2170 = vmatmul.mubr.msk.f32.vlgmr.msra.gmra.mxu1 %vm303_vm3, %v2169_v32 }
 0x203   : > { %2021 = vmatprep.mubr.f32.mxu1 %v2295_v0 }
 0x204   : > { %1889 = vmatprep.subr.mxu0 %v1853_v37  ;;  %v1935_v42 = vpop.permute.xlu1 %1934 }
 0x205   : > { %v1936_v43 = vsel %vm1049_vm8, %v1933_v41, %v1935_v42  ;;  %v1937_v44 = vsel %vm1049_vm8, %v1935_v42, %v1933_v41  ;;  %1890 = vmatpush1.msra.mxu0 %v1852_v36 }
 0x206   : > { %v1950_v8 = vmul.f32 %v1943_v38, %v1936_v43  ;;  %v1951_v9 = vmul.f32 %v1947_v39, %v1937_v44  ;;  %2173 = vmatmul.mubr.msk.f32.vlgmr.msra.gmra.mxu0 %vm303_vm3, %v2172_v40 }
 0x208   : > { %1987 = vmatprep.subr.mxu1 %v1951_v9 }
 0x209   : > { %1988 = vmatpush1.msra.mxu1 %v1950_v8  ;;  %v2034_v18 = vpop.permute.xlu0 %2033 }
 0x20a   : > { %2176 = vmatmul.mubr.msk.f32.vlgmr.msra.gmra.mxu1 %vm303_vm3, %v2175_v45 }
 0x2ae   : > { %v1271_v0 = vpop.f32.mrf.mxu1 }
 0x2b0   : > { %v1273_v46 = vpop.f32.mrf.mxu1 }
 0x2b2   : > { %v1345_v47 = vpop.f32.mrf.mxu0 }
 0x2b3   : > { %v1346_v48 = vadd.f32 %v1345_v47, %v1271_v0 }
 0x2b4   : > { %v1347_v49 = vpop.f32.mrf.mxu0 }
 0x2b5   : > { %v1348_v7 = vadd.f32 %v1347_v49, %v1273_v46 }
 0x2b6   : > { %v1441_v50 = vpop.f32.mrf.mxu1 }
 0x2b7   : > { %v1446_v51 = vadd.f32 %v1441_v50, %v1346_v48 }
 0x2b8   : > { %v1443_v52 = vpop.f32.mrf.mxu1 }
 0x2b9   : > { %v1447_v53 = vadd.f32 %v1443_v52, %v1348_v7 }
 0x2ba   : > { %v1539_v54 = vpop.f32.mrf.mxu0  ;;  %v1631_v55 = vpop.f32.mrf.mxu1 }
 0x2bb   : > { %v1544_v56 = vadd.f32 %v1539_v54, %v1446_v51 }
 0x2bc   : > { %v1541_v57 = vpop.f32.mrf.mxu0  ;;  %v1633_v60 = vpop.f32.mrf.mxu1 }
 0x2bd   : > { %v1545_v58 = vadd.f32 %v1541_v57, %v1447_v53  ;;  %v1636_v59 = vadd.f32 %v1631_v55, %v1544_v56 }
 0x2be   : > { %v1729_v61 = vpop.f32.mrf.mxu0 }
 0x2bf   : > { %v1637_v62 = vadd.f32 %v1633_v60, %v1545_v58  ;;  %v1734_v63 = vadd.f32 %v1729_v61, %v1636_v59 }
 0x2c0   : > { %v1731_v3 = vpop.f32.mrf.mxu0 }
 0x2c1   : > { %v1735_v5 = vadd.f32 %v1731_v3, %v1637_v62 }
 0x2c2   : > { %v1827_v4 = vpop.f32.mrf.mxu1 }
 0x2c3   : > { %v1832_v6 = vadd.f32 %v1827_v4, %v1734_v63 }
 0x2c4   : > { %v1829_v10 = vpop.f32.mrf.mxu1 }
 0x2c5   : > { %v1833_v13 = vadd.f32 %v1829_v10, %v1735_v5 }
 0x2c6   : > { %v1925_v11 = vpop.f32.mrf.mxu0 }
 0x2c7   : > { %v1930_v14 = vadd.f32 %v1925_v11, %v1832_v6 }
 0x2c8   : > { %v1927_v12 = vpop.f32.mrf.mxu0 }
 0x2c9   : > { %v1931_v16 = vadd.f32 %v1927_v12, %v1833_v13 }
 0x2ca   : > { %v2023_v15 = vpop.f32.mrf.mxu1 }
 0x2cb   : > { %v2028_v17 = vadd.f32 %v2023_v15, %v1930_v14 }
 0x2cc   : > { %v2025_v19 = vpop.f32.mrf.mxu1 }
 0x2cd   : > { %v2036_v20 = vadd.f32 %v2034_v18, %v2028_v17  ;;  %v2029_v21 = vadd.f32 %v2025_v19, %v1931_v16 }
 0x2cf   : > { %v2040_v22 = vadd.f32 %v2036_v20, %v2394_v1  ;;  %v2037_v23 = vadd.f32 %v2034_v18, %v2029_v21 }
 0x2d1   : > { %v2042_v24 = vmax.f32 %v2040_v22, 0.0  ;;  %v2041_v25 = vadd.f32 %v2037_v23, %v2401_v2 }
 0x2d3   : > { %v2043_v26 = vmax.f32 %v2041_v25, 0.0  ;;  %2044 = vst [vmem:[%s245_s9] sm:$0xff] %v2042_v24 }
 0x2d5   : > { %2045 = vst [vmem:[%s245_s9 + $0x8] sm:$0xff] %v2043_v26 }
 0x2d6   : > { %2246 = shalt.err (!%p2243_p3)
}
 0x2d7   : > { %s2247_s19 = scalar_lea.hbm %s2059_s14, 256  ;;  %s2251_s28 = scalar_lea.hbm %s2775_s6, 512 }
 0x2d8   : > { %p2248_p4 = scmp.ne.s32.totalorder %s2059_s14, %s2247_s19  ;;  %p2252_p9 = scmp.lt.s32.totalorder %s2059_s14, %s2775_s6 }
 0x2d9   : > { %p2253_p10 = scmp.lt.s32.totalorder %s2251_s28, %s2247_s19 }
 0x2da   : > { %p2249_p7 = pnand %p2248_p4, %p2379_p5 }
 0x2db   : > { %p2254_p11 = por %p2253_p10, %p2252_p9 }
 0x2dc   : > { %p2250_p8 = pneg %p2249_p7 }
 0x2de   : > { %p2255_p12 = pnand %p2254_p11, %p2250_p8 }
 0x2e0   : > { %2258 = shalt.err (!%p2255_p12)
}
 0x2e1   : > { %2183 = dma.vmem_to_hbm [thread:$0]  (%p2379_p5), %s2062_s10, 256, %s2059_s14, %s2047_s16  }
 0x2e2 PF: > { %p2189_p13 = scmp.ge.s32.totalorder %s2293_s24, 2  ;;  %s2073_s9 = sand.u32 1, %s2281_s21  }
 0x2e3   : > { %s2074_s11 = scalar_lea.sflag [#allocation4], %s2073_s9 }
 0x2e4   : > { %p2186_p0 = pnand %p2189_p13, %p2383_p6 }
 0x2e6   : > { %p2187_p1 = pneg %p2186_p0 }
 0x2e8   : > { %2276 = dma.done.wait (%p2187_p1), %s2074_s11, 256  }
 0x2e9   : > { %2278 = vsyncadd (%p2187_p1), %s2074_s11, 4294967040  ;;  %p16_p2 = scmp.ge.s32.totalorder %s2366_s27, 4   ;;  %s2781_s21 = smov %s2285_s22 }
 0x2ea   : > { %s2782_s22 = smov %s2289_s23  ;;  %s2783_s23 = smov %s2377_s30 }
 0x2eb   : > { %s2784_s24 = smov %s2366_s27  ;;  %18 = sbr.rel (!%p16_p2) target bundleno = 3 (0x3), region = 103 }
 0x2f0   :  { %2079 = vsyncpa [#allocation4], 1 }
 0x2f1   :  { %2081 = vsyncpa [#allocation4 + $0x1], 1 }

</bundles_post_ra>
